<compile_context>
chip_gen: v7x
topology: tpu7x:2x2x1
jax: 0.10.0
libtpu: 0.0.40
codegen_flags: <defaults>
</compile_context>

<pallas_src>
import functools

import jax
import jax.numpy as jnp
from jax.experimental import pallas as pl
from jax.experimental.pallas import tpu as pltpu


def _round_up(x, m):
    return (x + m - 1) // m * m


def _lassonet_kernel(n_layers, x_ref, wskip_ref, w0_ref, wrest_ref, b_ref,
                     out_ref):
    """Fused skip + MLP trunk on one (batch_tile, P_in) activation tile."""
    x = x_ref[...]

    # Skip connection: (TB, P_in) @ (P_in, P_h) on the MXU.
    result = jnp.dot(x, wskip_ref[...], preferred_element_type=jnp.float32)

    # MLP trunk (all widths padded to P_h -> every op is lane-dense).
    h = x
    for li in range(n_layers):
        w = w0_ref[...] if li == 0 else wrest_ref[li - 1]
        h = jnp.dot(h, w, preferred_element_type=jnp.float32) + b_ref[li]
        if li != n_layers - 1:
            h = jnp.maximum(h, 0.0)          # ReLU on hidden layers only

    out_ref[...] = (result + h).astype(out_ref.dtype)


def _choose_batch_tile(B, desired):
    """Largest multiple-of-8 tile <= desired that leaves >= 2 grid steps."""
    b8 = _round_up(B, 8)
    bt = max(8, (min(desired, b8) // 8) * 8)
    if b8 // bt < 2 and b8 >= 16:            # keep >=2 steps for v7x megacore
        bt = max(8, (b8 // 2 // 8) * 8)
    return bt


def lassonet_forward(x, skip_w, layer_ws, layer_bs, *, batch_tile=512):
    """Fused LassoNet forward.

    x        : (B, d_in)  float32
    skip_w   : (d_in, d_out)            (transposed PyTorch skip.weight)
    layer_ws : list of (d_i, d_{i+1})   (transposed PyTorch layer weights)
    layer_bs : list of (1, d_{i+1})
    """
    B, d_in = x.shape
    d_out = skip_w.shape[1]
    n_layers = len(layer_ws)
    assert n_layers >= 2, "LassoNet requires len(dims) > 2"

    # ---- pad feature dims to lane-dense widths -------------------------------
    P_in = _round_up(d_in, 128)
    P_h = max(_round_up(w.shape[1], 128) for w in layer_ws)   # hidden & output

    f32 = jnp.float32
    skip_p = jnp.zeros((P_in, P_h), f32).at[:d_in, :d_out].set(skip_w)
    w0 = layer_ws[0]
    w0_p = jnp.zeros((P_in, P_h), f32).at[:w0.shape[0], :w0.shape[1]].set(w0)
    wrest = jnp.zeros((n_layers - 1, P_h, P_h), f32)
    for li in range(1, n_layers):
        w = layer_ws[li]
        wrest = wrest.at[li - 1, :w.shape[0], :w.shape[1]].set(w)
    bpack = jnp.zeros((n_layers, 1, P_h), f32)
    for li in range(n_layers):
        b = jnp.reshape(layer_bs[li], (1, -1))
        bpack = bpack.at[li, :, :b.shape[1]].set(b)

    # ---- pad / tile the batch -------------------------------------------------
    bt = _choose_batch_tile(B, batch_tile)
    B_pad = _round_up(B, bt)
    x_p = jnp.zeros((B_pad, P_in), f32).at[:B, :d_in].set(x.astype(f32))
    grid = (B_pad // bt,)

    # ---- VMEM budget & cost estimate ------------------------------------------
    param_bytes = 4 * (skip_p.size + w0_p.size + wrest.size + bpack.size)
    io_bytes = 2 * 4 * (bt * P_in + bt * P_h)            # double-buffered tiles
    vmem_needed = 2 * param_bytes + io_bytes + 4 * 4 * bt * P_h
    vmem_limit = int(min(64 * 2**20, max(32 * 2**20, 2 * vmem_needed)))

    flops = 2 * B_pad * P_in * P_h * 2 + 2 * B_pad * P_h * P_h * (n_layers - 1)
    bytes_accessed = 4 * (x_p.size + B_pad * P_h) + param_bytes

    kernel = functools.partial(_lassonet_kernel, n_layers)

    in_specs = [
        pl.BlockSpec((bt, P_in), lambda i: (i, 0)),                   # x tile
        pl.BlockSpec((P_in, P_h), lambda i: (0, 0)),                  # skip W
        pl.BlockSpec((P_in, P_h), lambda i: (0, 0)),                  # layer 0 W
        pl.BlockSpec((n_layers - 1, P_h, P_h), lambda i: (0, 0, 0)),  # other Ws
        pl.BlockSpec((n_layers, 1, P_h), lambda i: (0, 0, 0)),        # biases
    ]
    out_spec = pl.BlockSpec((bt, P_h), lambda i: (i, 0))

    out_p = pl.pallas_call(
        kernel,
        out_shape=jax.ShapeDtypeStruct((B_pad, P_h), f32),
        grid=grid,
        in_specs=in_specs,
        out_specs=out_spec,
        compiler_params=pltpu.CompilerParams(
            dimension_semantics=("parallel",),
            vmem_limit_bytes=vmem_limit),
        cost_estimate=pl.CostEstimate(
            flops=flops, transcendentals=0, bytes_accessed=bytes_accessed),
    )(x_p, skip_p, w0_p, wrest, bpack)

    return out_p[:B, :d_out]


def init_lassonet_params(key, dims):
    """Deterministic init matching the PyTorch module:
    layer weights ~ U(-0.05, 0.05), layer biases = 0, skip ~ U(-1, 1)."""
    n_layers = len(dims) - 1
    keys = jax.random.split(key, n_layers + 1)
    layer_ws, layer_bs = [], []
    for i in range(n_layers):
        w = jax.random.uniform(keys[i], (dims[i], dims[i + 1]),
                               minval=-0.05, maxval=0.05, dtype=jnp.float32)
        b = jnp.zeros((1, dims[i + 1]), dtype=jnp.float32)
        layer_ws.append(w)
        layer_bs.append(b)
    skip_w = jax.random.uniform(keys[-1], (dims[0], dims[-1]),
                                minval=-1.0, maxval=1.0, dtype=jnp.float32)
    return skip_w, layer_ws, layer_bs


def lassonet_reference(x, skip_w, layer_ws, layer_bs):
    """Plain-JAX reference (mirrors the PyTorch forward)."""
    result = x @ skip_w
    h = x
    n = len(layer_ws)
    for i in range(n):
        h = h @ layer_ws[i] + layer_bs[i]
        if i != n - 1:
            h = jnp.maximum(h, 0.0)
    return result + h


if __name__ == "__main__":
    # dims: input=16, hidden=64, hidden=32, output=8  (len(dims) > 2 as required)
    dims = (16, 64, 32, 8)
    batch = 256

    key = jax.random.PRNGKey(0)
    k_x, k_params = jax.random.split(key)

    x = jax.random.normal(k_x, (batch, dims[0]), dtype=jnp.float32)
    skip_w, layer_ws, layer_bs = init_lassonet_params(k_params, dims)

    out = lassonet_forward(x, skip_w, layer_ws, layer_bs)
    out = jax.block_until_ready(out)

    ref = lassonet_reference(x, skip_w, layer_ws, layer_bs)
    assert out.shape == (batch, dims[-1])
    assert jnp.allclose(out, ref, atol=1e-5, rtol=1e-5), "mismatch vs reference"

    print("KERNEL_OK")
</pallas_src>

<mosaic_0001>
module attributes {stable_mosaic.version = 11 : i64} {
  func.func @_lassonet_kernel(%arg0: i32, %arg1: memref<128x128xf32, #tpu.memory_space<vmem>>, %arg2: memref<128x128xf32, #tpu.memory_space<vmem>>, %arg3: memref<128x128xf32, #tpu.memory_space<vmem>>, %arg4: memref<2x128x128xf32, #tpu.memory_space<vmem>>, %arg5: memref<3x1x128xf32, #tpu.memory_space<vmem>>, %arg6: memref<128x128xf32, #tpu.memory_space<vmem>>) attributes {dimension_semantics = [#tpu.dimension_semantics<parallel>], iteration_bounds = array<i64: 2>, scalar_prefetch = 0 : i64, scratch_operands = 0 : i64, tpu.core_type = #tpu.core_type<tc>, window_params = [{transform_indices = @transform_0, window_bounds = array<i64: 128, 128>}, {pipeline_mode = #tpu.pipeline_mode<synchronous>, transform_indices = @transform_1, window_bounds = array<i64: 128, 128>}, {pipeline_mode = #tpu.pipeline_mode<synchronous>, transform_indices = @transform_2, window_bounds = array<i64: 128, 128>}, {pipeline_mode = #tpu.pipeline_mode<synchronous>, transform_indices = @transform_3, window_bounds = array<i64: 2, 128, 128>}, {pipeline_mode = #tpu.pipeline_mode<synchronous>, transform_indices = @transform_4, window_bounds = array<i64: 3, 1, 128>}, {transform_indices = @transform_5, window_bounds = array<i64: 128, 128>}]} {
    %c0 = arith.constant 0 : index
    %c0_0 = arith.constant 0 : index
    %0 = vector.load %arg1[%c0, %c0_0] : memref<128x128xf32, #tpu.memory_space<vmem>>, vector<128x128xf32>
    %c0_1 = arith.constant 0 : index
    %c0_2 = arith.constant 0 : index
    %1 = vector.load %arg2[%c0_1, %c0_2] : memref<128x128xf32, #tpu.memory_space<vmem>>, vector<128x128xf32>
    %cst = arith.constant dense<0.000000e+00> : vector<128x128xf32>
    %2 = tpu.matmul %0, %1, %cst {dimension_numbers = #tpu.dot_dimension_numbers<[1], [0], [0], [1], [0, 0, 1, 1], [], []>} : vector<128x128xf32>, vector<128x128xf32>, vector<128x128xf32> -> vector<128x128xf32>
    %c0_3 = arith.constant 0 : index
    %c0_4 = arith.constant 0 : index
    %3 = vector.load %arg3[%c0_3, %c0_4] : memref<128x128xf32, #tpu.memory_space<vmem>>, vector<128x128xf32>
    %cst_5 = arith.constant dense<0.000000e+00> : vector<128x128xf32>
    %4 = tpu.matmul %0, %3, %cst_5 {dimension_numbers = #tpu.dot_dimension_numbers<[1], [0], [0], [1], [0, 0, 1, 1], [], []>} : vector<128x128xf32>, vector<128x128xf32>, vector<128x128xf32> -> vector<128x128xf32>
    %c0_6 = arith.constant 0 : index
    %c0_7 = arith.constant 0 : index
    %c0_8 = arith.constant 0 : index
    %5 = vector.load %arg5[%c0_6, %c0_7, %c0_8] : memref<3x1x128xf32, #tpu.memory_space<vmem>>, vector<1x1x128xf32>
    %6 = vector.shape_cast %5 : vector<1x1x128xf32> to vector<1x128xf32>
    %7 = vector.broadcast %6 : vector<1x128xf32> to vector<128x128xf32>
    %8 = arith.addf %4, %7 : vector<128x128xf32>
    %cst_9 = arith.constant 0.000000e+00 : f32
    %9 = vector.broadcast %cst_9 : f32 to vector<128x128xf32>
    %10 = arith.maximumf %8, %9 : vector<128x128xf32>
    %c0_10 = arith.constant 0 : index
    %c0_11 = arith.constant 0 : index
    %c0_12 = arith.constant 0 : index
    %11 = vector.load %arg4[%c0_10, %c0_11, %c0_12] : memref<2x128x128xf32, #tpu.memory_space<vmem>>, vector<1x128x128xf32>
    %12 = vector.shape_cast %11 : vector<1x128x128xf32> to vector<128x128xf32>
    %cst_13 = arith.constant dense<0.000000e+00> : vector<128x128xf32>
    %13 = tpu.matmul %10, %12, %cst_13 {dimension_numbers = #tpu.dot_dimension_numbers<[1], [0], [0], [1], [0, 0, 1, 1], [], []>} : vector<128x128xf32>, vector<128x128xf32>, vector<128x128xf32> -> vector<128x128xf32>
    %c1 = arith.constant 1 : index
    %c0_14 = arith.constant 0 : index
    %c0_15 = arith.constant 0 : index
    %14 = vector.load %arg5[%c1, %c0_14, %c0_15] : memref<3x1x128xf32, #tpu.memory_space<vmem>>, vector<1x1x128xf32>
    %15 = vector.shape_cast %14 : vector<1x1x128xf32> to vector<1x128xf32>
    %16 = vector.broadcast %15 : vector<1x128xf32> to vector<128x128xf32>
    %17 = arith.addf %13, %16 : vector<128x128xf32>
    %cst_16 = arith.constant 0.000000e+00 : f32
    %18 = vector.broadcast %cst_16 : f32 to vector<128x128xf32>
    %19 = arith.maximumf %17, %18 : vector<128x128xf32>
    %c1_17 = arith.constant 1 : index
    %c0_18 = arith.constant 0 : index
    %c0_19 = arith.constant 0 : index
    %20 = vector.load %arg4[%c1_17, %c0_18, %c0_19] : memref<2x128x128xf32, #tpu.memory_space<vmem>>, vector<1x128x128xf32>
    %21 = vector.shape_cast %20 : vector<1x128x128xf32> to vector<128x128xf32>
    %cst_20 = arith.constant dense<0.000000e+00> : vector<128x128xf32>
    %22 = tpu.matmul %19, %21, %cst_20 {dimension_numbers = #tpu.dot_dimension_numbers<[1], [0], [0], [1], [0, 0, 1, 1], [], []>} : vector<128x128xf32>, vector<128x128xf32>, vector<128x128xf32> -> vector<128x128xf32>
    %c2 = arith.constant 2 : index
    %c0_21 = arith.constant 0 : index
    %c0_22 = arith.constant 0 : index
    %23 = vector.load %arg5[%c2, %c0_21, %c0_22] : memref<3x1x128xf32, #tpu.memory_space<vmem>>, vector<1x1x128xf32>
    %24 = vector.shape_cast %23 : vector<1x1x128xf32> to vector<1x128xf32>
    %25 = vector.broadcast %24 : vector<1x128xf32> to vector<128x128xf32>
    %26 = arith.addf %22, %25 : vector<128x128xf32>
    %27 = arith.addf %2, %26 : vector<128x128xf32>
    %c0_23 = arith.constant 0 : index
    %c0_24 = arith.constant 0 : index
    %28 = vector.load %arg6[%c0_23, %c0_24] : memref<128x128xf32, #tpu.memory_space<vmem>>, vector<128x128xf32>
    tpu.vector_store %arg6[%c0_23, %c0_24], %27 {strides = array<i32>} : memref<128x128xf32, #tpu.memory_space<vmem>>, vector<128x128xf32>,
    return
  }
  func.func @transform_0(%arg0: i32) -> (i32, i32) {
    %c0_i32 = arith.constant 0 : i32
    %c0_i32_0 = arith.constant 0 : i32
    return %arg0, %c0_i32 : i32, i32
  }
  func.func @transform_1(%arg0: i32) -> (i32, i32) {
    %c0_i32 = arith.constant 0 : i32
    %c0_i32_0 = arith.constant 0 : i32
    %c0_i32_1 = arith.constant 0 : i32
    return %c0_i32, %c0_i32_0 : i32, i32
  }
  func.func @transform_2(%arg0: i32) -> (i32, i32) {
    %c0_i32 = arith.constant 0 : i32
    %c0_i32_0 = arith.constant 0 : i32
    %c0_i32_1 = arith.constant 0 : i32
    return %c0_i32, %c0_i32_0 : i32, i32
  }
  func.func @transform_3(%arg0: i32) -> (i32, i32, i32) {
    %c0_i32 = arith.constant 0 : i32
    %c0_i32_0 = arith.constant 0 : i32
    %c0_i32_1 = arith.constant 0 : i32
    %c0_i32_2 = arith.constant 0 : i32
    return %c0_i32, %c0_i32_0, %c0_i32_1 : i32, i32, i32
  }
  func.func @transform_4(%arg0: i32) -> (i32, i32, i32) {
    %c0_i32 = arith.constant 0 : i32
    %c0_i32_0 = arith.constant 0 : i32
    %c0_i32_1 = arith.constant 0 : i32
    %c0_i32_2 = arith.constant 0 : i32
    return %c0_i32, %c0_i32_0, %c0_i32_1 : i32, i32, i32
  }
  func.func @transform_5(%arg0: i32) -> (i32, i32) {
    %c0_i32 = arith.constant 0 : i32
    %c0_i32_0 = arith.constant 0 : i32
    return %arg0, %c0_i32 : i32, i32
  }
}

</mosaic_0001>

<bundles_post_ra>
// kernel: tpu_custom_call.1
= control target key start
LH: loop header
LB: loop body
LE: loop exit
PB: predicated region body
PF: predicated region fallthrough
CT: control target
= control target key end

     0   :  { %10 = vsyncpa [#allocation3], 0  ;;  %s2389_s0 = inlined_call_operand.hbm [shape: f32[256,128], index: 0, kind: input, shape index: {}]   ;;  %s2390_s1 = inlined_call_operand.hbm [shape: f32[128,128], index: 1, kind: input, shape index: {}]   ;;  %s2391_s2 = inlined_call_operand.hbm [shape: f32[128,128], index: 2, kind: input, shape index: {}]   ;;  %s2392_s3 = inlined_call_operand.hbm [shape: f32[2,128,128], index: 3, kind: input, shape index: {}]   ;;  %s2393_s4 = inlined_call_operand.vmem [shape: f32[3,1,128], index: 4, kind: input, shape index: {}]   ;;  %s2394_s5 = inlined_call_operand.hbm [shape: f32[256,128], index: 5, kind: output, shape index: {}]  }
   0x1   :  { %12 = vsyncpa [#allocation3 + $0x1], 0 }
   0x2   :  { %13 = vsyncpa [#allocation6], 0 }
   0x3   :  { %14 = vsyncpa [#allocation9], 0 }
   0x4   :  { %15 = vsyncpa [#allocation4], 0 }
   0x5   :  { %17 = vsyncpa [#allocation4 + $0x1], 0  ;;  %s1986_s18 = smov 0   ;;  %s1988_s19 = smov 0  }
   0x6   :  { %s1990_s20 = smov 0   ;;  %s1992_s21 = smov 0  }
   0x7 LB: > { %s2007_s22 = sadd.s32 4294967295, %s1945_s21   ;;  %s1137_s23 = sadd.s32 4294967294, %s1945_s21   ;;  %s1945_s21 = sphi %s1992_s21, %s2417_s21   ;;  %s1941_s20 = sphi %s1990_s20, %s2416_s20   ;;  %s1937_s19 = sphi %s1988_s19, %s2415_s19   ;;  %s1933_s18 = sphi %s1986_s18, %s2414_s18  }
   0x8   : > { %p43_p0 = scmp.ne.s32.totalorder %s1937_s19, %s1933_s18  ;;  %p2395_p1 = scmp.eq.s32.totalorder %s2007_s22, 0 }
   0x9   : > { %p157_p3 = scmp.eq.s32.totalorder %s1137_s23, 1  ;;  %p1138_p5 = scmp.ge.s32.totalorder %s1945_s21, 1 }
   0xa   : > { %p2016_p4 = por %p2395_p1, %p43_p0  ;;  %p164_p7 = scmp.lt.s32.totalorder %s1945_s21, 3 }
   0xb   : > { %p2021_p6 = por %p157_p3, %p43_p0  ;;  %s1947_s27 = smov [#allocation5]  }
   0xc   : > { %s2398_s24 = scalar_select %p2016_p4, 1, 0 }
   0xd   : > { %s2399_s25 = scalar_select %p2021_p6, 1, 0 }
   0xe   : > { %p2026_p8 = pnand %p1138_p5, %p164_p7  ;;  %s176_s28 = sshll.u32 %s1947_s27, 4  ;;  %s2030_s28 = int_to_ptr.vmem [resolvable:$true] %s176_s28 }
   0xf   : > { %s1948_s30 = smov [#allocation7]   ;;  %s1949_s7 = smov [#allocation8]  }
  0x10   : > { %s2400_s26 = scalar_select %p2026_p8, 1, 0 }
  0x11   : > { %p1692_p9 = pneg %p2026_p8  ;;  %s189_s6 = sshll.u32 %s1948_s30, 4  ;;  %s2041_s6 = int_to_ptr.vmem [resolvable:$true] %s189_s6 }
  0x12   : > { %s2043_s8 = sshll.u32 %s1949_s7, 4  ;;  %s1757_s11 = scalar_lea.hbm %s2390_s1, 2048  ;;  %s203_s8 = int_to_ptr.vmem [resolvable:$true] %s2043_s8 }
  0x13   : > { %p2037_p11 = pnand %p1692_p9, %p2395_p1  ;;  %p1758_p12 = scmp.ne.s32.totalorder %s2390_s1, %s1757_s11 }
  0x14   : > { %p1764_p5 = scmp.lt.u32.totalorder %s1757_s11, %s2390_s1 }
  0x15   : > { %p2053_p13 = pneg %p2037_p11 }
  0x17   : > { %p1760_p0 = pnand %p2053_p13, %p1758_p12 }
  0x19   : > { %p1761_p3 = pneg %p1760_p0 }
  0x1b   : > { %p1766_p7 = pnand %p1764_p5, %p1761_p3 }
  0x1d   : > { %1769 = shalt.err (!%p1766_p7)
}
  0x1e   : > { %s1770_s17 = scalar_lea.vmem %s2030_s28, 2048  ;;  %p1778_p2 = scmp.lt.s32.totalorder %s2030_s28, %s2030_s28 }
  0x1f   : > { %p1771_p9 = scmp.ne.s32.totalorder %s2030_s28, %s1770_s17  ;;  %p1779_p6 = scmp.lt.s32.totalorder %s1770_s17, %s1770_s17 }
  0x21   : > { %p1773_p10 = pnand %p1771_p9, %p2053_p13  ;;  %p1780_p12 = por %p1779_p6, %p1778_p2 }
  0x23   : > { %p1774_p1 = pneg %p1773_p10 }
  0x25   : > { %p1781_p0 = pnand %p1780_p12, %p1774_p1 }
  0x27   : > { %1784 = shalt.err (!%p1781_p0)
}
  0x28   : > { %s1950_s23 = smov 128   ;;  %s1951_s27 = smov 8  }
  0x29   : > { %1695 = dma.hbm_to_vmem [thread:$0]  (!%p2037_p11), %s2390_s1, 2048, %s2030_s28, [#allocation6], %s1950_s23, %s1950_s23, %s1951_s27  }
  0x2a   : > { %s1785_s11 = scalar_lea.hbm %s2391_s2, 2048 }
  0x2b   : > { %p1786_p1 = scmp.ne.s32.totalorder %s2391_s2, %s1785_s11  ;;  %p1792_p10 = scmp.lt.u32.totalorder %s1785_s11, %s2391_s2 }
  0x2d   : > { %p1788_p2 = pnand %p1786_p1, %p2053_p13 }
  0x2f   : > { %p1789_p6 = pneg %p1788_p2 }
  0x31   : > { %p1794_p3 = pnand %p1792_p10, %p1789_p6 }
  0x33   : > { %1797 = shalt.err (!%p1794_p3)
}
  0x34   : > { %s1798_s28 = scalar_lea.vmem %s2041_s6, 2048  ;;  %p1806_p12 = scmp.lt.s32.totalorder %s2041_s6, %s2041_s6 }
  0x35   : > { %p1799_p5 = scmp.ne.s32.totalorder %s2041_s6, %s1798_s28  ;;  %p1807_p0 = scmp.lt.s32.totalorder %s1798_s28, %s1798_s28 }
  0x37   : > { %p1801_p7 = pnand %p1799_p5, %p2053_p13  ;;  %p1808_p1 = por %p1807_p0, %p1806_p12 }
  0x39   : > { %p1802_p9 = pneg %p1801_p7 }
  0x3b   : > { %p1809_p2 = pnand %p1808_p1, %p1802_p9 }
  0x3d   : > { %1812 = shalt.err (!%p1809_p2)
}
  0x3e   : > { %1698 = dma.hbm_to_vmem [thread:$0]  (!%p2037_p11), %s2391_s2, 2048, %s2041_s6, [#allocation6], %s1950_s23, %s1950_s23, %s1951_s27  }
  0x3f   : > { %s1813_s10 = scalar_lea.hbm %s2392_s3, 4096 }
  0x40   : > { %p1814_p6 = scmp.ne.s32.totalorder %s2392_s3, %s1813_s10  ;;  %p1820_p5 = scmp.lt.u32.totalorder %s1813_s10, %s2392_s3 }
  0x42   : > { %p1816_p10 = pnand %p1814_p6, %p2053_p13 }
  0x44   : > { %p1817_p3 = pneg %p1816_p10 }
  0x46   : > { %p1822_p7 = pnand %p1820_p5, %p1817_p3 }
  0x48   : > { %1825 = shalt.err (!%p1822_p7)
}
  0x49   : > { %s1826_s16 = scalar_lea.vmem %s203_s8, 4096  ;;  %p1834_p1 = scmp.lt.s32.totalorder %s203_s8, %s203_s8 }
  0x4a   : > { %p1827_p9 = scmp.ne.s32.totalorder %s203_s8, %s1826_s16  ;;  %p1835_p2 = scmp.lt.s32.totalorder %s1826_s16, %s1826_s16 }
  0x4c   : > { %p1829_p12 = pnand %p1827_p9, %p2053_p13  ;;  %p1836_p4 = por %p1835_p2, %p1834_p1 }
  0x4e   : > { %p1830_p0 = pneg %p1829_p12 }
  0x50   : > { %p1837_p8 = pnand %p1836_p4, %p1830_p0 }
  0x52   : > { %1840 = shalt.err (!%p1837_p8)
}
  0x53   : > { %1701 = dma.hbm_to_vmem [thread:$0]  (!%p2037_p11), %s2392_s3, 4096, %s203_s8, [#allocation9], %s1950_s23, %s1950_s23, %s1951_s27  }
  0x54   : > { %s2126_s14 = sadd.s32 1, %s1945_s21   ;;  %s30_s17 = sadd.s32 1, %s1941_s20 }
  0x55   : > { %s27_s29 = ssub.s32 %s1945_s21, %s2126_s14  ;;  %p37_p8 = scmp.ne.s32.totalorder %s1941_s20, %s1937_s19 }
  0x56   : > { %p28_p4 = scmp.eq.s32.totalorder %s27_s29, 0  ;;  %p38_p13 = scmp.eq.s32.totalorder %s1945_s21, 0 }
  0x57   : > { %p1713_p6 = scmp.lt.s32.totalorder %s1945_s21, 2  ;;  %p2403_p3 = scmp.eq.s32.totalorder %s2007_s22, 1 }
  0x58   : > { %s2136_s30 = scalar_select %p28_p4, %s1941_s20, %s30_s17  }
  0x59   : > { %p39_p10 = por %p38_p13, %p37_p8  ;;  %p2140_p5 = por %p2403_p3, %p37_p8 }
  0x5a   : > { %s219_s9 = sand.u32 1, %s1941_s20   ;;  %s1162_s10 = sshll.u32 %s1945_s21, 11 }
  0x5b   : > { %s1143_s8 = sshll.u32 %s219_s9, 7  ;;  %s2149_s13 = scalar_lea.hbm %s2389_s0, %s1162_s10 }
  0x5c   : > { %s223_s15 = scalar_lea.vmem [#allocation2], %s1143_s8  ;;  %p2151_p11 = pnand %p1713_p6, %p39_p10 }
  0x5d   : > { %s230_s16 = sshll.u32 %s223_s15, 4  ;;  %s2157_s28 = scalar_lea.sflag [#allocation3], %s219_s9  ;;  %s2155_s16 = int_to_ptr.vmem [resolvable:$true] %s230_s16 }
  0x5e   : > { %s1841_s29 = scalar_lea.hbm %s2149_s13, 2048  ;;  %p1843_p9 = pneg %p2151_p11 }
  0x5f   : > { %p1842_p7 = scmp.ne.s32.totalorder %s2149_s13, %s1841_s29  ;;  %s1846_s8 = scalar_lea.hbm %s2389_s0, 4096 }
  0x60   : > { %p1847_p1 = scmp.lt.u32.totalorder %s2149_s13, %s2389_s0  ;;  %p1848_p2 = scmp.lt.u32.totalorder %s1846_s8, %s1841_s29 }
  0x61   : > { %p1844_p12 = pnand %p1843_p9, %p1842_p7  ;;  %p1850_p8 = scmp.lt.u32.totalorder %s1841_s29, %s2149_s13 }
  0x62   : > { %p1849_p4 = por %p1848_p2, %p1847_p1 }
  0x63   : > { %p1845_p0 = pneg %p1844_p12 }
  0x64   : > { %p1851_p13 = por %p1850_p8, %p1849_p4 }
  0x66   : > { %p1852_p6 = pnand %p1851_p13, %p1845_p0 }
  0x68   : > { %1855 = shalt.err (!%p1852_p6)
}
  0x69   : > { %s1856_s9 = scalar_lea.vmem %s2155_s16, 2048  ;;  %s1952_s15 = smov [#allocation2]  }
  0x6a   : > { %p1857_p10 = scmp.ne.s32.totalorder %s2155_s16, %s1856_s9  ;;  %s1861_s17 = sshll.u32 %s1952_s15, 4  ;;  %s1862_s17 = int_to_ptr.vmem [resolvable:$false] %s1861_s17 }
  0x6b   : > { %s1863_s10 = scalar_lea.vmem %s1862_s17, 4096  ;;  %p1864_p12 = scmp.lt.s32.totalorder %s2155_s16, %s1862_s17 }
  0x6c   : > { %p1859_p3 = pnand %p1857_p10, %p1843_p9  ;;  %p1865_p1 = scmp.lt.s32.totalorder %s1863_s10, %s1856_s9 }
  0x6e   : > { %p1860_p7 = pneg %p1859_p3  ;;  %p1866_p2 = por %p1865_p1, %p1864_p12 }
  0x70   : > { %p1867_p4 = pnand %p1866_p2, %p1860_p7 }
  0x72   : > { %1870 = shalt.err (!%p1867_p4)
}
  0x73   : > { %1705 = dma.hbm_to_vmem [thread:$0]  (!%p2151_p11), %s2149_s13, 2048, %s2155_s16, %s2157_s28, %s1950_s23, %s1950_s23, %s1951_s27  }
  0x74   : > { %p2406_p9 = scmp.ne.s32.totalorder %s2400_s26, 0 }
  0x75   : > { %s2191_s29 = sand.u32 (!%p2406_p9), 1, %s1937_s19   ;;  %p2407_p0 = scmp.ne.s32.totalorder (!%p2406_p9), %s2398_s24, 0 }
  0x76   : > { %242 = sbr.rel (%p2406_p9) target bundleno = 894 (0x37e), region = 40  ;;  %s1147_s8 = sshll.u32 (!%p2406_p9), %s2191_s29, 7 }
  0x77   : > { %s245_s11 = scalar_lea.sflag (!%p2406_p9), [#allocation3], %s2191_s29  ;;  %s2197_s6 = scalar_lea.vmem (!%p2406_p9), [#allocation2], %s1147_s8 }
  0x7d   : > { %1916 = dma.done.wait (%p2407_p0), %s245_s11, 2048  }
  0x7e   : > { %1918 = vsyncadd (%p2407_p0), %s245_s11, 4294965248  ;;  %p2408_p11 = scmp.eq.s32.totalorder %s2007_s22, 0 }
  0x80   : > { %1920 = dma.done.wait (%p2408_p11), [#allocation6], 4096   ;;  %p2409_p8 = pmov %p2408_p11 }
  0x82   : > { %1922 = vsyncadd (%p2409_p8), [#allocation6], 4294963200  ;;  %p2410_p13 = pmov %p2409_p8 }
  0x83   : > { %p2411_p6 = pmov %p2409_p8 }
  0x84   : > { %1924 = dma.done.wait (%p2410_p13), [#allocation9], 4096  }
  0x85   : > { %1926 = vsyncadd (%p2411_p6), [#allocation9], 4294963200  ;;  %v321_v0 = vld [vmem:[#allocation7] sm:$0xff]  ;;  %v322_v1 = vld [vmem:[#allocation7 + $0x8] sm:$0xff]  ;;  %s2320_s28 = scalar_lea.vmem [#allocation10], %s1147_s8  ;;  %s1163_s12 = sshll.u32 %s2007_s22, 11 }
  0x86   : > { %v323_v2 = vld [vmem:[#allocation7 + $0x10] sm:$0xff]  ;;  %v1516_v3 = vpack.c.bf16 %v322_v1, %v321_v0  ;;  %v324_v4 = vld [vmem:[#allocation7 + $0x18] sm:$0xff]  ;;  %v325_v6 = vld [vmem:[#allocation7 + $0x20] sm:$0xff]  ;;  %s1035_s9 = sshll.u32 %s2320_s28, 4  ;;  %s2341_s10 = scalar_lea.hbm %s2394_s5, %s1163_s12  ;;  %s2343_s9 = int_to_ptr.vmem [resolvable:$true] %s1035_s9 }
  0x87   : > { %v1520_v5 = vpack.c.bf16 %v324_v4, %v323_v2  ;;  %v326_v7 = vld [vmem:[#allocation7 + $0x28] sm:$0xff]  ;;  %v2212_v9 = vld [vmem:[%s2197_s6] sm:$0xff]  ;;  %v327_v10 = vld [vmem:[#allocation7 + $0x30] sm:$0xff]  ;;  %s1022_s22 = scalar_lea.sflag [#allocation4], %s2191_s29  ;;  %s1871_s8 = scalar_lea.vmem %s2343_s9, 2048 }
  0x88   : > { %1517 = vmatprep.subr.bf16.mxu1 %v1516_v3  ;;  %v1524_v8 = vpack.c.bf16 %v326_v7, %v325_v6  ;;  %v328_v11 = vld [vmem:[#allocation7 + $0x38] sm:$0xff]  ;;  %1324 = vmatprep.mubr.f32.mxu1 %v2212_v9  ;;  %v329_v13 = vld [vmem:[#allocation7 + $0x40] sm:$0xff]  ;;  %v330_v14 = vld [vmem:[#allocation7 + $0x48] sm:$0xff]  ;;  %p1872_p10 = scmp.ne.s32.totalorder %s2343_s9, %s1871_s8  ;;  %s1953_s11 = smov [#allocation10]  }
  0x89   : > { %1519 = vmatpush3.bf16.msra.mxu1 %v1516_v3  ;;  %v1528_v12 = vpack.c.bf16 %v328_v11, %v327_v10  ;;  %v1532_v15 = vpack.c.bf16 %v330_v14, %v329_v13  ;;  %v331_v16 = vld [vmem:[#allocation7 + $0x50] sm:$0xff]  ;;  %v332_v17 = vld [vmem:[#allocation7 + $0x58] sm:$0xff]  ;;  %v333_v19 = vld [vmem:[#allocation7 + $0x60] sm:$0xff] }
  0x8a   : > { %1521 = vmatprep.subr.bf16.mxu1 %v1520_v5  ;;  %v1536_v18 = vpack.c.bf16 %v332_v17, %v331_v16  ;;  %v334_v20 = vld [vmem:[#allocation7 + $0x68] sm:$0xff]  ;;  %v335_v22 = vld [vmem:[#allocation7 + $0x70] sm:$0xff]  ;;  %v336_v23 = vld [vmem:[#allocation7 + $0x78] sm:$0xff]  ;;  %p1873_p3 = pnand %p1872_p10, %p2140_p5 }
  0x8b   : > { %v1540_v21 = vpack.c.bf16 %v334_v20, %v333_v19  ;;  %v1544_v24 = vpack.c.bf16 %v336_v23, %v335_v22  ;;  %v505_v25 = vld [vmem:[#allocation8] sm:$0xff]  ;;  %v506_v26 = vld [vmem:[#allocation8 + $0x8] sm:$0xff]  ;;  %v507_v28 = vld [vmem:[#allocation8 + $0x10] sm:$0xff] }
  0x8c   : > { %v1548_v27 = vpack.c.bf16 %v506_v26, %v505_v25  ;;  %v508_v29 = vld [vmem:[#allocation8 + $0x18] sm:$0xff]  ;;  %v2216_v30 = vld [vmem:[%s2197_s6 + $0x8] sm:$0xff]  ;;  %v2219_v31 = vld [vmem:[%s2197_s6 + $0x10] sm:$0xff]  ;;  %p1874_p7 = pneg %p1873_p3 }
  0x8d   : > { %1523 = vmatpush3.bf16.msra.mxu1 %v1520_v5  ;;  %v1552_v32 = vpack.c.bf16 %v508_v29, %v507_v28  ;;  %v509_v33 = vld [vmem:[#allocation8 + $0x20] sm:$0xff]  ;;  %v510_v34 = vld [vmem:[#allocation8 + $0x28] sm:$0xff]  ;;  %v2224_v35 = vld [vmem:[%s2197_s6 + $0x18] sm:$0xff] }
  0x8e   : > { %1525 = vmatprep.subr.bf16.mxu1 %v1524_v8  ;;  %v2227_v36 = vld [vmem:[%s2197_s6 + $0x20] sm:$0xff]  ;;  %v1556_v37 = vpack.c.bf16 %v510_v34, %v509_v33  ;;  %v511_v38 = vld [vmem:[#allocation8 + $0x30] sm:$0xff]  ;;  %v512_v39 = vld [vmem:[#allocation8 + $0x38] sm:$0xff] }
  0x8f   : > { %v2232_v40 = vld [vmem:[%s2197_s6 + $0x28] sm:$0xff]  ;;  %v2235_v41 = vld [vmem:[%s2197_s6 + $0x30] sm:$0xff]  ;;  %v1560_v42 = vpack.c.bf16 %v512_v39, %v511_v38  ;;  %v513_v43 = vld [vmem:[#allocation8 + $0x40] sm:$0xff] }
  0x90   : > { %v514_v44 = vld [vmem:[#allocation8 + $0x48] sm:$0xff]  ;;  %v2240_v45 = vld [vmem:[%s2197_s6 + $0x38] sm:$0xff]  ;;  %v2243_v46 = vld [vmem:[%s2197_s6 + $0x40] sm:$0xff] }
  0x91   : > { %1527 = vmatpush3.bf16.msra.mxu1 %v1524_v8  ;;  %v1564_v47 = vpack.c.bf16 %v514_v44, %v513_v43  ;;  %v515_v48 = vld [vmem:[#allocation8 + $0x50] sm:$0xff]  ;;  %v516_v49 = vld [vmem:[#allocation8 + $0x58] sm:$0xff]  ;;  %v2248_v50 = vld [vmem:[%s2197_s6 + $0x48] sm:$0xff] }
  0x92   : > { %1529 = vmatprep.subr.bf16.mxu1 %v1528_v12  ;;  %v2251_v51 = vld [vmem:[%s2197_s6 + $0x50] sm:$0xff]  ;;  %v1568_v52 = vpack.c.bf16 %v516_v49, %v515_v48  ;;  %v517_v53 = vld [vmem:[#allocation8 + $0x60] sm:$0xff]  ;;  %v518_v54 = vld [vmem:[#allocation8 + $0x68] sm:$0xff] }
  0x93   : > { %v2256_v55 = vld [vmem:[%s2197_s6 + $0x58] sm:$0xff]  ;;  %v2259_v56 = vld [vmem:[%s2197_s6 + $0x60] sm:$0xff]  ;;  %v1572_v57 = vpack.c.bf16 %v518_v54, %v517_v53  ;;  %v2264_v58 = vld [vmem:[%s2197_s6 + $0x68] sm:$0xff] }
  0x94   : > { %v2267_v59 = vld [vmem:[%s2197_s6 + $0x70] sm:$0xff]  ;;  %v2272_v60 = vld [vmem:[%s2197_s6 + $0x78] sm:$0xff]  ;;  %v691_v0 = vld [vmem:[#allocation8 + $0x80] sm:$0xff]  ;;  %s1875_s6 = sshll.u32 %s1953_s11, 4  ;;  %s1876_s6 = int_to_ptr.vmem [resolvable:$false] %s1875_s6 }
  0x95   : > { %1531 = vmatpush3.bf16.msra.mxu1 %v1528_v12  ;;  %v519_v61 = vld [vmem:[#allocation8 + $0x70] sm:$0xff]  ;;  %v520_v62 = vld [vmem:[#allocation8 + $0x78] sm:$0xff]  ;;  %v692_v1 = vld [vmem:[#allocation8 + $0x88] sm:$0xff]  ;;  %s1877_s24 = scalar_lea.vmem %s1876_s6, 4096  ;;  %p1878_p12 = scmp.lt.s32.totalorder %s2343_s9, %s1876_s6 }
  0x96   : > { %1533 = vmatprep.subr.bf16.mxu1 %v1532_v15  ;;  %v1576_v63 = vpack.c.bf16 %v520_v62, %v519_v61  ;;  %v693_v2 = vld [vmem:[#allocation8 + $0x90] sm:$0xff]  ;;  %v1580_v3 = vpack.c.bf16 %v692_v1, %v691_v0  ;;  %v694_v4 = vld [vmem:[#allocation8 + $0x98] sm:$0xff]  ;;  %v695_v6 = vld [vmem:[#allocation8 + $0xa0] sm:$0xff]  ;;  %p1879_p1 = scmp.lt.s32.totalorder %s1877_s24, %s1871_s8 }
  0x97   : > { %v1584_v5 = vpack.c.bf16 %v694_v4, %v693_v2  ;;  %v696_v7 = vld [vmem:[#allocation8 + $0xa8] sm:$0xff]  ;;  %v697_v10 = vld [vmem:[#allocation8 + $0xb0] sm:$0xff]  ;;  %v698_v11 = vld [vmem:[#allocation8 + $0xb8] sm:$0xff] }
  0x98   : > { %1581 = vmatprep.subr.bf16.mxu0 %v1580_v3  ;;  %v1588_v8 = vpack.c.bf16 %v696_v7, %v695_v6  ;;  %v1592_v12 = vpack.c.bf16 %v698_v11, %v697_v10  ;;  %v699_v13 = vld [vmem:[#allocation8 + $0xc0] sm:$0xff]  ;;  %v700_v14 = vld [vmem:[#allocation8 + $0xc8] sm:$0xff]  ;;  %v701_v16 = vld [vmem:[#allocation8 + $0xd0] sm:$0xff]  ;;  %p1880_p2 = por %p1879_p1, %p1878_p12 }
  0x99   : > { %1535 = vmatpush3.bf16.msra.mxu1 %v1532_v15  ;;  %1583 = vmatpush3.bf16.msra.mxu0 %v1580_v3  ;;  %v1596_v15 = vpack.c.bf16 %v700_v14, %v699_v13  ;;  %v702_v17 = vld [vmem:[#allocation8 + $0xd8] sm:$0xff]  ;;  %v703_v19 = vld [vmem:[#allocation8 + $0xe0] sm:$0xff]  ;;  %v704_v20 = vld [vmem:[#allocation8 + $0xe8] sm:$0xff] }
  0x9a   : > { %1537 = vmatprep.subr.bf16.mxu1 %v1536_v18  ;;  %1585 = vmatprep.subr.bf16.mxu0 %v1584_v5  ;;  %v1152_v22 = vld [vmem:[%s2393_s4] ss:$0 sm:$0xff]  ;;  %p1881_p4 = pnand %p1880_p2, %p1874_p7 }
  0x9d   : > { %1539 = vmatpush3.bf16.msra.mxu1 %v1536_v18  ;;  %1587 = vmatpush3.bf16.msra.mxu0 %v1584_v5  ;;  %v1600_v18 = vpack.c.bf16 %v702_v17, %v701_v16 }
  0x9e   : > { %1541 = vmatprep.subr.bf16.mxu1 %v1540_v21  ;;  %1589 = vmatprep.subr.bf16.mxu0 %v1588_v8 }
  0xa1   : > { %1543 = vmatpush3.bf16.msra.mxu1 %v1540_v21  ;;  %1591 = vmatpush3.bf16.msra.mxu0 %v1588_v8  ;;  %v1604_v21 = vpack.c.bf16 %v704_v20, %v703_v19 }
  0xa2   : > { %1545 = vmatprep.subr.bf16.mxu1 %v1544_v24  ;;  %1593 = vmatprep.subr.bf16.mxu0 %v1592_v12 }
  0xa5   : > { %1547 = vmatpush3.bf16.msra.mxu1 %v1544_v24  ;;  %1595 = vmatpush3.bf16.msra.mxu0 %v1592_v12 }
  0xa6   : > { %1549 = vmatprep.subr.bf16.mxu1 %v1548_v27  ;;  %1597 = vmatprep.subr.bf16.mxu0 %v1596_v15 }
  0xa8   : > { %1325 = vmatmul.mubr.f32.vlgmr.msra.gmra.mrb[0].mxu1 %v2216_v30 }
  0xa9   : > { %1327 = vmatprep.mubr.f32.mxu1 %v2219_v31  ;;  %1551 = vmatpush3.bf16.msra.mxu1 %v1548_v27 }
  0xaa   : > { %1553 = vmatprep.subr.bf16.mxu1 %v1552_v32  ;;  %1599 = vmatpush3.bf16.msra.mxu0 %v1596_v15 }
  0xab   : > { %1601 = vmatprep.subr.bf16.mxu0 %v1600_v18 }
  0xac   : > { %1328 = vmatmul.mubr.f32.gmra.mrb[2].mxu1 %v2224_v35 }
  0xad   : > { %1330 = vmatprep.mubr.f32.mxu1 %v2227_v36  ;;  %1555 = vmatpush3.bf16.msra.mxu1 %v1552_v32 }
  0xae   : > { %1557 = vmatprep.subr.bf16.mxu1 %v1556_v37  ;;  %1603 = vmatpush3.bf16.msra.mxu0 %v1600_v18 }
  0xaf   : > { %1605 = vmatprep.subr.bf16.mxu0 %v1604_v21 }
  0xb0   : > { %1331 = vmatmul.mubr.f32.gmra.mrb[4].mxu1 %v2232_v40 }
  0xb1   : > { %1333 = vmatprep.mubr.f32.mxu1 %v2235_v41  ;;  %1559 = vmatpush3.bf16.msra.mxu1 %v1556_v37 }
  0xb2   : > { %1561 = vmatprep.subr.bf16.mxu1 %v1560_v42  ;;  %1607 = vmatpush3.bf16.msra.mxu0 %v1604_v21 }
  0xb4   : > { %1334 = vmatmul.mubr.f32.gmra.mrb[6].mxu1 %v2240_v45 }
  0xb5   : > { %1336 = vmatprep.mubr.f32.mxu1 %v2243_v46  ;;  %1563 = vmatpush3.bf16.msra.mxu1 %v1560_v42 }
  0xb6   : > { %1565 = vmatprep.subr.bf16.mxu1 %v1564_v47 }
  0xb8   : > { %1337 = vmatmul.mubr.f32.gmra.mrb[8].mxu1 %v2248_v50 }
  0xb9   : > { %1339 = vmatprep.mubr.f32.mxu1 %v2251_v51  ;;  %1567 = vmatpush3.bf16.msra.mxu1 %v1564_v47 }
  0xba   : > { %1569 = vmatprep.subr.bf16.mxu1 %v1568_v52 }
  0xbc   : > { %1340 = vmatmul.mubr.f32.gmra.mrb[10].mxu1 %v2256_v55 }
  0xbd   : > { %1342 = vmatprep.mubr.f32.mxu1 %v2259_v56  ;;  %1571 = vmatpush3.bf16.msra.mxu1 %v1568_v52 }
  0xbe   : > { %1573 = vmatprep.subr.bf16.mxu1 %v1572_v57 }
  0xc0   : > { %1343 = vmatmul.mubr.f32.gmra.mrb[12].mxu1 %v2264_v58 }
  0xc1   : > { %1345 = vmatprep.mubr.f32.mxu1 %v2267_v59  ;;  %1575 = vmatpush3.bf16.msra.mxu1 %v1572_v57 }
  0xc2   : > { %1577 = vmatprep.subr.bf16.mxu1 %v1576_v63 }
  0xc4   : > { %1346 = vmatmul.mubr.f32.gmra.mrb[14].mxu1 %v2272_v60 }
  0xc5   : > { %1579 = vmatpush3.bf16.msra.mxu1 %v1576_v63 }
 0x17b   : > { %v1326_v23 = vpop.f32.mrb[0].mxu1 }
 0x17c   : > { %v416_v24 = vadd.f32 %v1326_v23, %v1152_v22  ;;  %v410_v25 = vpop.f32.mrb[1].mxu1 }
 0x17d   : > { %v411_v26 = vadd.f32 %v1152_v22, %v410_v25  ;;  %v706_v25 = vld [vmem:[#allocation8 + $0xf8] sm:$0xff] }
 0x17e   : > { %v490_v29 = vmax.f32 %v416_v24, 0.0  ;;  %v705_v24 = vld [vmem:[#allocation8 + $0xf0] sm:$0xff] }
 0x17f   : > { %v489_v27 = vmax.f32 %v411_v26, 0.0  ;;  %v1329_v28 = vpop.f32.mrb[2].mxu1  ;;  %v1608_v26 = vpack.c.bf16 %v706_v25, %v705_v24  ;;  %v316_v24 = vld [vmem:[#allocation5 + $0x58] sm:$0xff] }
 0x180   : > { %v426_v32 = vadd.f32 %v1329_v28, %v1152_v22  ;;  %v420_v33 = vpop.f32.mrb[3].mxu1  ;;  %v306_v28 = vld [vmem:[#allocation5 + $0x8] sm:$0xff] }
 0x181   : > { %v421_v34 = vadd.f32 %v1152_v22, %v420_v33  ;;  %1380 = vmatprep.mubr.f32.mxu1 %v489_v27  ;;  %1609 = vmatprep.subr.bf16.mxu0 %v1608_v26  ;;  %v305_v27 = vld [vmem:[#allocation5] sm:$0xff] }
 0x182   : > { %1381 = vmatmul.mubr.f32.vlgmr.msra.gmra.mrb[16].mxu1 %v490_v29  ;;  %v492_v39 = vmax.f32 %v426_v32, 0.0  ;;  %1611 = vmatpush3.bf16.msra.mxu0 %v1608_v26  ;;  %v1612_v29 = vpack.c.bf16 %v306_v28, %v305_v27  ;;  %v2281_v32 = vld [vmem:[%s2393_s4 + $0x1] ss:$0 sm:$0xff] }
 0x183   : > { %v491_v37 = vmax.f32 %v421_v34, 0.0  ;;  %v1332_v38 = vpop.f32.mrb[4].mxu1 }
 0x184   : > { %v436_v42 = vadd.f32 %v1332_v38, %v1152_v22  ;;  %v430_v43 = vpop.f32.mrb[5].mxu1  ;;  %1613 = vmatprep.subr.bf16.mxu0 %v1612_v29  ;;  %v307_v38 = vld [vmem:[#allocation5 + $0x10] sm:$0xff] }
 0x185   : > { %v431_v44 = vadd.f32 %v1152_v22, %v430_v43  ;;  %1383 = vmatprep.mubr.f32.mxu1 %v491_v37 }
 0x186   : > { %1384 = vmatmul.mubr.f32.gmra.mrb[18].mxu1 %v492_v39  ;;  %v494_v49 = vmax.f32 %v436_v42, 0.0  ;;  %v308_v39 = vld [vmem:[#allocation5 + $0x18] sm:$0xff] }
 0x187   : > { %v493_v47 = vmax.f32 %v431_v44, 0.0  ;;  %v1335_v48 = vpop.f32.mrb[6].mxu1 }
 0x188   : > { %v446_v52 = vadd.f32 %v1335_v48, %v1152_v22  ;;  %v440_v53 = vpop.f32.mrb[7].mxu1 }
 0x189   : > { %v441_v54 = vadd.f32 %v1152_v22, %v440_v53  ;;  %1386 = vmatprep.mubr.f32.mxu1 %v493_v47  ;;  %v309_v53 = vld [vmem:[#allocation5 + $0x20] sm:$0xff] }
 0x18a   : > { %1387 = vmatmul.mubr.f32.gmra.mrb[20].mxu1 %v494_v49  ;;  %v496_v62 = vmax.f32 %v446_v52, 0.0  ;;  %v1616_v49 = vpack.c.bf16 %v308_v39, %v307_v38 }
 0x18b   : > { %v495_v57 = vmax.f32 %v441_v54, 0.0  ;;  %v1338_v61 = vpop.f32.mrb[8].mxu1  ;;  %v310_v54 = vld [vmem:[#allocation5 + $0x28] sm:$0xff] }
 0x18c   : > { %v456_v63 = vadd.f32 %v1338_v61, %v1152_v22  ;;  %v450_v0 = vpop.f32.mrb[9].mxu1 }
 0x18d   : > { %v451_v1 = vadd.f32 %v1152_v22, %v450_v0  ;;  %1389 = vmatprep.mubr.f32.mxu1 %v495_v57 }
 0x18e   : > { %1390 = vmatmul.mubr.f32.gmra.mrb[22].mxu1 %v496_v62  ;;  %v498_v4 = vmax.f32 %v456_v63, 0.0 }
 0x18f   : > { %v497_v2 = vmax.f32 %v451_v1, 0.0  ;;  %v1341_v3 = vpop.f32.mrb[10].mxu1  ;;  %v1620_v1 = vpack.c.bf16 %v310_v54, %v309_v53 }
 0x190   : > { %v466_v5 = vadd.f32 %v1341_v3, %v1152_v22  ;;  %v460_v6 = vpop.f32.mrb[11].mxu1  ;;  %v311_v3 = vld [vmem:[#allocation5 + $0x30] sm:$0xff] }
 0x191   : > { %v461_v7 = vadd.f32 %v1152_v22, %v460_v6  ;;  %1392 = vmatprep.mubr.f32.mxu1 %v497_v2 }
 0x192   : > { %1393 = vmatmul.mubr.f32.gmra.mrb[24].mxu1 %v498_v4  ;;  %v500_v11 = vmax.f32 %v466_v5, 0.0  ;;  %v312_v4 = vld [vmem:[#allocation5 + $0x38] sm:$0xff] }
 0x193   : > { %v499_v8 = vmax.f32 %v461_v7, 0.0  ;;  %v1344_v10 = vpop.f32.mrb[12].mxu1 }
 0x194   : > { %v476_v12 = vadd.f32 %v1344_v10, %v1152_v22  ;;  %v470_v13 = vpop.f32.mrb[13].mxu1 }
 0x195   : > { %v471_v14 = vadd.f32 %v1152_v22, %v470_v13  ;;  %1395 = vmatprep.mubr.f32.mxu1 %v499_v8  ;;  %v313_v13 = vld [vmem:[#allocation5 + $0x40] sm:$0xff] }
 0x196   : > { %1396 = vmatmul.mubr.f32.gmra.mrb[26].mxu1 %v500_v11  ;;  %v502_v17 = vmax.f32 %v476_v12, 0.0  ;;  %v1624_v11 = vpack.c.bf16 %v312_v4, %v311_v3 }
 0x197   : > { %v501_v15 = vmax.f32 %v471_v14, 0.0  ;;  %v1347_v16 = vpop.f32.mrb[14].mxu1  ;;  %v314_v14 = vld [vmem:[#allocation5 + $0x48] sm:$0xff] }
 0x198   : > { %v486_v18 = vadd.f32 %v1347_v16, %v1152_v22  ;;  %v480_v19 = vpop.f32.mrb[15].mxu1 }
 0x199   : > { %v481_v20 = vadd.f32 %v1152_v22, %v480_v19  ;;  %1398 = vmatprep.mubr.f32.mxu1 %v501_v15 }
 0x19a   : > { %1399 = vmatmul.mubr.f32.gmra.mrb[28].mxu1 %v502_v17  ;;  %v504_v23 = vmax.f32 %v486_v18, 0.0 }
 0x19b   : > { %v503_v21 = vmax.f32 %v481_v20, 0.0  ;;  %v1628_v20 = vpack.c.bf16 %v314_v14, %v313_v13 }
 0x19d   : > { %1401 = vmatprep.mubr.f32.mxu1 %v503_v21 }
 0x19e   : > { %1402 = vmatmul.mubr.f32.gmra.mrb[30].mxu1 %v504_v23  ;;  %v315_v23 = vld [vmem:[#allocation5 + $0x50] sm:$0xff] }
 0x255   : > { %v1382_v22 = vpop.f32.mrb[16].mxu1 }
 0x256   : > { %v601_v33 = vadd.f32 %v1382_v22, %v2281_v32  ;;  %v595_v34 = vpop.f32.mrb[17].mxu1  ;;  %v1632_v22 = vpack.c.bf16 %v316_v24, %v315_v23 }
 0x257   : > { %v596_v37 = vadd.f32 %v2281_v32, %v595_v34  ;;  %v317_v34 = vld [vmem:[#allocation5 + $0x60] sm:$0xff] }
 0x258   : > { %v675_v44 = vmax.f32 %v601_v33, 0.0 }
 0x259   : > { %v1385_v42 = vpop.f32.mrb[18].mxu1  ;;  %v674_v43 = vmax.f32 %v596_v37, 0.0  ;;  %v318_v37 = vld [vmem:[#allocation5 + $0x68] sm:$0xff] }
 0x25a   : > { %v611_v47 = vadd.f32 %v1385_v42, %v2281_v32  ;;  %v605_v48 = vpop.f32.mrb[19].mxu1 }
 0x25b   : > { %v606_v52 = vadd.f32 %v2281_v32, %v605_v48  ;;  %1436 = vmatprep.mubr.f32.mxu0 %v674_v43 }
 0x25c   : > { %1437 = vmatmul.mubr.f32.vlgmr.msra.gmra.mrb[0].mxu0 %v675_v44  ;;  %v677_v62 = vmax.f32 %v611_v47, 0.0  ;;  %v1636_v47 = vpack.c.bf16 %v318_v37, %v317_v34 }
 0x25d   : > { %v676_v57 = vmax.f32 %v606_v52, 0.0  ;;  %1615 = vmatpush3.bf16.msra.mxu0 %v1612_v29  ;;  %v1388_v61 = vpop.f32.mrb[20].mxu1  ;;  %v320_v52 = vld [vmem:[#allocation5 + $0x78] sm:$0xff] }
 0x25e   : > { %v621_v63 = vadd.f32 %v1388_v61, %v2281_v32  ;;  %v615_v0 = vpop.f32.mrb[21].mxu1  ;;  %1617 = vmatprep.subr.bf16.mxu0 %v1616_v49 }
 0x25f   : > { %v616_v2 = vadd.f32 %v2281_v32, %v615_v0  ;;  %1439 = vmatprep.mubr.f32.mxu0 %v676_v57 }
 0x260   : > { %1440 = vmatmul.mubr.f32.gmra.mrb[2].mxu0 %v677_v62  ;;  %v679_v7 = vmax.f32 %v621_v63, 0.0 }
 0x261   : > { %v678_v5 = vmax.f32 %v616_v2, 0.0  ;;  %1619 = vmatpush3.bf16.msra.mxu0 %v1616_v49  ;;  %v1391_v6 = vpop.f32.mrb[22].mxu1  ;;  %v319_v49 = vld [vmem:[#allocation5 + $0x70] sm:$0xff] }
 0x262   : > { %v631_v8 = vadd.f32 %v1391_v6, %v2281_v32  ;;  %v625_v10 = vpop.f32.mrb[23].mxu1  ;;  %1621 = vmatprep.subr.bf16.mxu0 %v1620_v1  ;;  %v1640_v63 = vpack.c.bf16 %v320_v52, %v319_v49 }
 0x263   : > { %v626_v12 = vadd.f32 %v2281_v32, %v625_v10  ;;  %1442 = vmatprep.mubr.f32.mxu0 %v678_v5 }
 0x264   : > { %1443 = vmatmul.mubr.f32.gmra.mrb[4].mxu0 %v679_v7  ;;  %v681_v17 = vmax.f32 %v631_v8, 0.0 }
 0x265   : > { %v680_v15 = vmax.f32 %v626_v12, 0.0  ;;  %1623 = vmatpush3.bf16.msra.mxu0 %v1620_v1  ;;  %v1394_v16 = vpop.f32.mrb[24].mxu1 }
 0x266   : > { %v641_v18 = vadd.f32 %v1394_v16, %v2281_v32  ;;  %v635_v19 = vpop.f32.mrb[25].mxu1  ;;  %1625 = vmatprep.subr.bf16.mxu0 %v1624_v11 }
 0x267   : > { %v636_v21 = vadd.f32 %v2281_v32, %v635_v19  ;;  %1445 = vmatprep.mubr.f32.mxu0 %v680_v15 }
 0x268   : > { %1446 = vmatmul.mubr.f32.gmra.mrb[6].mxu0 %v681_v17  ;;  %v683_v27 = vmax.f32 %v641_v18, 0.0 }
 0x269   : > { %v682_v25 = vmax.f32 %v636_v21, 0.0  ;;  %1627 = vmatpush3.bf16.msra.mxu0 %v1624_v11  ;;  %v1397_v26 = vpop.f32.mrb[26].mxu1 }
 0x26a   : > { %v651_v28 = vadd.f32 %v1397_v26, %v2281_v32  ;;  %v645_v29 = vpop.f32.mrb[27].mxu1  ;;  %1629 = vmatprep.subr.bf16.mxu0 %v1628_v20 }
 0x26b   : > { %v646_v33 = vadd.f32 %v2281_v32, %v645_v29  ;;  %1448 = vmatprep.mubr.f32.mxu0 %v682_v25 }
 0x26c   : > { %1449 = vmatmul.mubr.f32.gmra.mrb[8].mxu0 %v683_v27  ;;  %v685_v42 = vmax.f32 %v651_v28, 0.0 }
 0x26d   : > { %v684_v38 = vmax.f32 %v646_v33, 0.0  ;;  %1631 = vmatpush3.bf16.msra.mxu0 %v1628_v20  ;;  %v1400_v39 = vpop.f32.mrb[28].mxu1 }
 0x26e   : > { %v661_v43 = vadd.f32 %v1400_v39, %v2281_v32  ;;  %v655_v44 = vpop.f32.mrb[29].mxu1  ;;  %1633 = vmatprep.subr.bf16.mxu0 %v1632_v22 }
 0x26f   : > { %v656_v48 = vadd.f32 %v2281_v32, %v655_v44  ;;  %1451 = vmatprep.mubr.f32.mxu0 %v684_v38 }
 0x270   : > { %1452 = vmatmul.mubr.f32.gmra.mrb[10].mxu0 %v685_v42  ;;  %v687_v57 = vmax.f32 %v661_v43, 0.0 }
 0x271   : > { %v686_v53 = vmax.f32 %v656_v48, 0.0  ;;  %1635 = vmatpush3.bf16.msra.mxu0 %v1632_v22  ;;  %v1403_v54 = vpop.f32.mrb[30].mxu1 }
 0x272   : > { %v671_v61 = vadd.f32 %v1403_v54, %v2281_v32  ;;  %v665_v62 = vpop.f32.mrb[31].mxu1  ;;  %1637 = vmatprep.subr.bf16.mxu0 %v1636_v47 }
 0x273   : > { %v666_v0 = vadd.f32 %v2281_v32, %v665_v62  ;;  %1454 = vmatprep.mubr.f32.mxu0 %v686_v53 }
 0x274   : > { %1455 = vmatmul.mubr.f32.gmra.mrb[12].mxu0 %v687_v57  ;;  %v689_v2 = vmax.f32 %v671_v61, 0.0 }
 0x275   : > { %v688_v1 = vmax.f32 %v666_v0, 0.0  ;;  %1639 = vmatpush3.bf16.msra.mxu0 %v1636_v47 }
 0x276   : > { %1641 = vmatprep.subr.bf16.mxu0 %v1640_v63 }
 0x277   : > { %1457 = vmatprep.mubr.f32.mxu0 %v688_v1 }
 0x278   : > { %1458 = vmatmul.mubr.f32.gmra.mrb[14].mxu0 %v689_v2 }
 0x279   : > { %1643 = vmatpush3.bf16.msra.mxu0 %v1640_v63  ;;  %1492 = vmatprep.mubr.f32.mxu0 %v2212_v9  ;;  %v1156_v9 = vld [vmem:[%s2393_s4 + $0x2] ss:$0 sm:$0xff] }
 0x27c   : > { %1493 = vmatmul.mubr.f32.vlgmr.msra.gmra.mrb[0].mxu0 %v2216_v30 }
 0x27d   : > { %1495 = vmatprep.mubr.f32.mxu0 %v2219_v31 }
 0x280   : > { %1496 = vmatmul.mubr.f32.gmra.mrb[2].mxu0 %v2224_v35 }
 0x281   : > { %1498 = vmatprep.mubr.f32.mxu0 %v2227_v36 }
 0x284   : > { %1499 = vmatmul.mubr.f32.gmra.mrb[4].mxu0 %v2232_v40 }
 0x285   : > { %1501 = vmatprep.mubr.f32.mxu0 %v2235_v41 }
 0x288   : > { %1502 = vmatmul.mubr.f32.gmra.mrb[6].mxu0 %v2240_v45 }
 0x289   : > { %1504 = vmatprep.mubr.f32.mxu0 %v2243_v46 }
 0x28c   : > { %1505 = vmatmul.mubr.f32.gmra.mrb[8].mxu0 %v2248_v50 }
 0x28d   : > { %1507 = vmatprep.mubr.f32.mxu0 %v2251_v51 }
 0x290   : > { %1508 = vmatmul.mubr.f32.gmra.mrb[10].mxu0 %v2256_v55 }
 0x291   : > { %1510 = vmatprep.mubr.f32.mxu0 %v2259_v56 }
 0x294   : > { %1511 = vmatmul.mubr.f32.gmra.mrb[12].mxu0 %v2264_v58 }
 0x295   : > { %1513 = vmatprep.mubr.f32.mxu0 %v2267_v59 }
 0x298   : > { %1514 = vmatmul.mubr.f32.gmra.mrb[14].mxu0 %v2272_v60 }
 0x34f   : > { %v1494_v30 = vpop.f32.mrb[0].mxu0 }
 0x350   : > { %v1644_v31 = vadd.f32 %v1494_v30, %v1156_v9  ;;  %v926_v35 = vpop.f32.mrb[1].mxu0 }
 0x351   : > { %v1645_v36 = vadd.f32 %v1156_v9, %v926_v35 }
 0x352   : > { %1006 = vst [vmem:[%s2320_s28 + $0x8] sm:$0xff] %v1644_v31 }
 0x353   : > { %1005 = vst [vmem:[%s2320_s28] sm:$0xff] %v1645_v36  ;;  %v1497_v40 = vpop.f32.mrb[2].mxu0 }
 0x354   : > { %v1646_v41 = vadd.f32 %v1497_v40, %v1156_v9  ;;  %v936_v45 = vpop.f32.mrb[3].mxu0 }
 0x355   : > { %v1647_v46 = vadd.f32 %v1156_v9, %v936_v45 }
 0x356   : > { %1008 = vst [vmem:[%s2320_s28 + $0x18] sm:$0xff] %v1646_v41 }
 0x357   : > { %1007 = vst [vmem:[%s2320_s28 + $0x10] sm:$0xff] %v1647_v46  ;;  %v1500_v50 = vpop.f32.mrb[4].mxu0 }
 0x358   : > { %v1648_v51 = vadd.f32 %v1500_v50, %v1156_v9  ;;  %v946_v55 = vpop.f32.mrb[5].mxu0 }
 0x359   : > { %v1649_v56 = vadd.f32 %v1156_v9, %v946_v55 }
 0x35a   : > { %1010 = vst [vmem:[%s2320_s28 + $0x28] sm:$0xff] %v1648_v51 }
 0x35b   : > { %1009 = vst [vmem:[%s2320_s28 + $0x20] sm:$0xff] %v1649_v56  ;;  %v1503_v58 = vpop.f32.mrb[6].mxu0 }
 0x35c   : > { %v1650_v59 = vadd.f32 %v1503_v58, %v1156_v9  ;;  %v956_v60 = vpop.f32.mrb[7].mxu0 }
 0x35d   : > { %v1651_v32 = vadd.f32 %v1156_v9, %v956_v60 }
 0x35e   : > { %1012 = vst [vmem:[%s2320_s28 + $0x38] sm:$0xff] %v1650_v59 }
 0x35f   : > { %1011 = vst [vmem:[%s2320_s28 + $0x30] sm:$0xff] %v1651_v32  ;;  %v1506_v3 = vpop.f32.mrb[8].mxu0 }
 0x360   : > { %v1652_v4 = vadd.f32 %v1506_v3, %v1156_v9  ;;  %v966_v5 = vpop.f32.mrb[9].mxu0 }
 0x361   : > { %v1653_v6 = vadd.f32 %v1156_v9, %v966_v5 }
 0x362   : > { %1014 = vst [vmem:[%s2320_s28 + $0x48] sm:$0xff] %v1652_v4 }
 0x363   : > { %1013 = vst [vmem:[%s2320_s28 + $0x40] sm:$0xff] %v1653_v6  ;;  %v1509_v7 = vpop.f32.mrb[10].mxu0 }
 0x364   : > { %v1654_v8 = vadd.f32 %v1509_v7, %v1156_v9  ;;  %v976_v10 = vpop.f32.mrb[11].mxu0 }
 0x365   : > { %v1655_v11 = vadd.f32 %v1156_v9, %v976_v10 }
 0x366   : > { %1016 = vst [vmem:[%s2320_s28 + $0x58] sm:$0xff] %v1654_v8 }
 0x367   : > { %1015 = vst [vmem:[%s2320_s28 + $0x50] sm:$0xff] %v1655_v11  ;;  %v1512_v12 = vpop.f32.mrb[12].mxu0 }
 0x368   : > { %v1656_v13 = vadd.f32 %v1512_v12, %v1156_v9  ;;  %v986_v14 = vpop.f32.mrb[13].mxu0 }
 0x369   : > { %v1657_v15 = vadd.f32 %v1156_v9, %v986_v14 }
 0x36a   : > { %1018 = vst [vmem:[%s2320_s28 + $0x68] sm:$0xff] %v1656_v13 }
 0x36b   : > { %1017 = vst [vmem:[%s2320_s28 + $0x60] sm:$0xff] %v1657_v15  ;;  %v1515_v16 = vpop.f32.mrb[14].mxu0 }
 0x36c   : > { %v1658_v17 = vadd.f32 %v1515_v16, %v1156_v9  ;;  %v996_v18 = vpop.f32.mrb[15].mxu0 }
 0x36d   : > { %v1659_v19 = vadd.f32 %v1156_v9, %v996_v18 }
 0x36e   : > { %1020 = vst [vmem:[%s2320_s28 + $0x78] sm:$0xff] %v1658_v17 }
 0x36f   : > { %1019 = vst [vmem:[%s2320_s28 + $0x70] sm:$0xff] %v1659_v19 }
 0x370   : > { %1884 = shalt.err (!%p1881_p4)
}
 0x371   : > { %s1885_s26 = scalar_lea.hbm %s2341_s10, 2048  ;;  %s1889_s13 = scalar_lea.hbm %s2394_s5, 4096 }
 0x372   : > { %p1886_p9 = scmp.ne.s32.totalorder %s2341_s10, %s1885_s26  ;;  %p1890_p8 = scmp.lt.u32.totalorder %s2341_s10, %s2394_s5 }
 0x373   : > { %p1891_p13 = scmp.lt.u32.totalorder %s1889_s13, %s1885_s26  ;;  %p1893_p10 = scmp.lt.u32.totalorder %s1885_s26, %s2341_s10 }
 0x374   : > { %p1887_p0 = pnand %p1886_p9, %p2140_p5 }
 0x375   : > { %p1892_p6 = por %p1891_p13, %p1890_p8 }
 0x376   : > { %p1888_p11 = pneg %p1887_p0 }
 0x377   : > { %p1894_p3 = por %p1893_p10, %p1892_p6 }
 0x379   : > { %p1895_p7 = pnand %p1894_p3, %p1888_p11 }
 0x37b   : > { %1898 = shalt.err (!%p1895_p7)
}
 0x37c   : > { %s1954_s12 = smov 128   ;;  %s1955_s15 = smov 8  }
 0x37d   : > { %1690 = dma.vmem_to_hbm [thread:$0]  (%p2140_p5), %s2343_s9, 2048, %s2341_s10, %s1022_s22, %s1954_s12, %s1954_s12, %s1955_s15  }
 0x37e PF: > { %s1050_s17 = sand.u32 1, %s1933_s18   ;;  %p2412_p12 = scmp.ne.s32.totalorder %s2399_s25, 0 }
 0x37f   : > { %p2413_p1 = scmp.ge.s32.totalorder %s1945_s21, 2  ;;  %s1051_s8 = scalar_lea.sflag [#allocation4], %s1050_s17 }
 0x381   : > { %p1707_p2 = pnand %p2413_p1, %p2412_p12 }
 0x383   : > { %1928 = dma.done.wait (!%p1707_p2), %s1051_s8, 2048  }
 0x384   : > { %1930 = vsyncadd (!%p1707_p2), %s1051_s8, 4294965248  ;;  %p20_p4 = scmp.ge.s32.totalorder %s2126_s14, 4   ;;  %s2414_s18 = smov %s1937_s19 }
 0x385   : > { %s2415_s19 = smov %s1941_s20  ;;  %s2416_s20 = smov %s2136_s30 }
 0x386   : > { %s2417_s21 = smov %s2126_s14  ;;  %22 = sbr.rel (!%p20_p4) target bundleno = 7 (0x7), region = 100 }
 0x38d   :  { %1056 = vsyncpa [#allocation3], 1 }
 0x38e   :  { %1058 = vsyncpa [#allocation3 + $0x1], 1 }
 0x38f   :  { %1059 = vsyncpa [#allocation6], 1 }
 0x390   :  { %1060 = vsyncpa [#allocation9], 1 }
 0x391   :  { %1061 = vsyncpa [#allocation4], 1 }
 0x392   :  { %1063 = vsyncpa [#allocation4 + $0x1], 1 }

</bundles_post_ra>
